<compile_context>
chip_gen: v6e
topology: v6e:2x2x1
jax: 0.10.0
libtpu: 0.0.40
codegen_flags: <defaults>
</compile_context>

<pallas_src>
import functools
import math

import jax
import jax.numpy as jnp
from jax.experimental import pallas as pl
from jax.experimental.pallas import tpu as pltpu

_LANE = 128     # f32 lane width
_SUBLANE = 8    # f32 sublane width


def _round_up(x, m):
    return ((x + m - 1) // m) * m


# --------------------------------------------------------------------------
# Kernel
# --------------------------------------------------------------------------
def _sender_gs_kernel(x_ref, w_ref, b_ref, o_ref, *, matmul_dtype):
    # out[b, h] = tanh( sum_f x[b, f] * W_t[f, h] + bias[h] )
    x = x_ref[...].astype(matmul_dtype)              # [tb, F]
    w = w_ref[...].astype(matmul_dtype)              # [F, th]  (pre-transposed)
    acc = jnp.dot(x, w, preferred_element_type=jnp.float32)   # MXU, f32 acc
    acc = acc + b_ref[...]                           # [1, th] broadcast over rows
    o_ref[...] = jnp.tanh(acc).astype(o_ref.dtype)   # EUP tanh, lane-dense store


# --------------------------------------------------------------------------
# One-time parameter preparation (do NOT redo per call)
# --------------------------------------------------------------------------
def prepare_sender_gs_params(weight, bias):
    """weight: [H, F] (PyTorch nn.Linear layout), bias: [H].

    Returns (w_t [F, Hp], bias2d [1, Hp], H) with Hp = roundup(H, 128).
    """
    H, F = weight.shape
    Hp = _round_up(H, _LANE)
    w_t = jnp.transpose(weight)                      # [F, H]  (one-time cost)
    if Hp != H:
        w_t = jnp.pad(w_t, ((0, 0), (0, Hp - H)))
        bias = jnp.pad(bias, (0, Hp - H))
    return w_t, bias.reshape(1, Hp), H


# --------------------------------------------------------------------------
# Tiling heuristics
# --------------------------------------------------------------------------
def _pick_tile_b(B, cap=512):
    if B <= _SUBLANE:
        return B                                     # full-dim block
    # >= 2 grid steps for pipeline overlap and v7x's two TensorCores.
    t = min(cap, _round_up(pl.cdiv(B, 2), _SUBLANE))
    return max(_SUBLANE, min(t, _round_up(B, _SUBLANE)))


def _pick_tile_h(Hp, F, budget_bytes=16 << 20):
    bytes_per_col = _round_up(F, _SUBLANE) * 4
    max_cols = max(_LANE, ((budget_bytes // bytes_per_col) // _LANE) * _LANE)
    return min(Hp, max_cols)


def _vmem_bytes(tile_b, tile_h, F, n_buf_param, itemsize=4):
    f_lane = _round_up(F, _LANE)       # x tile is lane-padded in VMEM
    f_sub = _round_up(F, _SUBLANE)     # weight tile is sublane-padded
    x_b = 2 * tile_b * f_lane * itemsize
    w_b = n_buf_param * f_sub * tile_h * itemsize
    bias_b = n_buf_param * _SUBLANE * tile_h * itemsize
    o_b = 2 * tile_b * tile_h * itemsize
    return x_b + w_b + bias_b + o_b


# --------------------------------------------------------------------------
# Forward
# --------------------------------------------------------------------------
def sender_gs_forward(x, w_t, bias2d, n_hidden=None, *,
                      tile_b=None, tile_h=None, matmul_dtype=None):
    """Pallas equivalent of SenderGS.forward.

    x:       [..., n_features] float32
    w_t:     [n_features, Hp]  (from prepare_sender_gs_params)
    bias2d:  [1, Hp]
    returns  [..., n_hidden]
    """
    lead_shape = x.shape[:-1]
    F = x.shape[-1]
    x2 = x.reshape(-1, F)
    B = x2.shape[0]

    Fw, Hp = w_t.shape
    assert Fw == F, (Fw, F)
    H = Hp if n_hidden is None else n_hidden
    if matmul_dtype is None:
        matmul_dtype = x2.dtype

    if tile_h is None:
        tile_h = _pick_tile_h(Hp, F)
    if tile_b is None:
        tile_b = _pick_tile_b(B)

    num_h = pl.cdiv(Hp, tile_h)
    n_buf_param = 1 if num_h == 1 else 2   # single-buffer constant-index params

    # Keep the working set inside a ~40 MiB budget (safe for v7x's 64 MiB).
    budget = 40 << 20
    while tile_b > _SUBLANE and _vmem_bytes(tile_b, tile_h, F, n_buf_param) > budget:
        tile_b = max(_SUBLANE, _round_up(tile_b // 2, _SUBLANE))
    while tile_h > _LANE and _vmem_bytes(tile_b, tile_h, F, n_buf_param) > budget:
        tile_h = max(_LANE, ((tile_h // 2) // _LANE) * _LANE)
        num_h = pl.cdiv(Hp, tile_h)
        n_buf_param = 1 if num_h == 1 else 2

    num_b = pl.cdiv(B, tile_b)
    grid = (num_b, num_h)

    vmem_limit = _vmem_bytes(tile_b, tile_h, F, n_buf_param) + (4 << 20)
    vmem_limit = int(min(max(vmem_limit, 32 << 20), 64 << 20))

    param_mode = pl.Buffered(n_buf_param)

    out = pl.pallas_call(
        functools.partial(_sender_gs_kernel, matmul_dtype=matmul_dtype),
        out_shape=jax.ShapeDtypeStruct((B, Hp), x2.dtype),
        grid_spec=pltpu.PrefetchScalarGridSpec(
            num_scalar_prefetch=0,
            grid=grid,
            in_specs=[
                # x tile: streams over batch, constant over hidden tiles.
                pl.BlockSpec((tile_b, F), lambda i, j: (i, 0)),
                # weight tile: constant over batch, streams over hidden tiles
                # (single-buffered when fully resident).
                pl.BlockSpec((F, tile_h), lambda i, j: (0, j),
                             pipeline_mode=param_mode),
                pl.BlockSpec((1, tile_h), lambda i, j: (0, j),
                             pipeline_mode=param_mode),
            ],
            out_specs=pl.BlockSpec((tile_b, tile_h), lambda i, j: (i, j)),
        ),
        compiler_params=pltpu.CompilerParams(
            dimension_semantics=("parallel", "parallel"),
            vmem_limit_bytes=vmem_limit,
        ),
    )(x2, w_t, bias2d)

    if H != Hp:
        # TODO(synk): downstream consumers could keep the Hp-padded layout to
        # avoid this extra B x H copy.
        out = out[:, :H]
    return out.reshape(*lead_shape, H)


def _reference(x, weight, bias):
    return jnp.tanh(x @ weight.T + bias)


if __name__ == "__main__":
    # Small shapes implied by the module: batch=8, n_features=16, n_hidden=32.
    B, n_features, n_hidden = 8, 16, 32

    key = jax.random.PRNGKey(0)
    kx, kw, kb = jax.random.split(key, 3)

    x = jax.random.normal(kx, (B, n_features), dtype=jnp.float32)

    # Deterministic nn.Linear-style init: U(-1/sqrt(fan_in), 1/sqrt(fan_in)).
    bound = 1.0 / math.sqrt(n_features)
    weight = jax.random.uniform(
        kw, (n_hidden, n_features), minval=-bound, maxval=bound,
        dtype=jnp.float32)
    bias = jax.random.uniform(
        kb, (n_hidden,), minval=-bound, maxval=bound, dtype=jnp.float32)

    # Pad / transpose the parameters once (module init time), not per call.
    w_t, b2, H = prepare_sender_gs_params(weight, bias)

    ref = _reference(x, weight, bias)

    # Exact-semantics path (f32 MXU operands).
    out = jax.block_until_ready(sender_gs_forward(x, w_t, b2, n_hidden=H))
    assert out.shape == (B, n_hidden)
    assert jnp.allclose(out, ref, atol=1e-5, rtol=1e-5), "f32 mismatch vs reference"

    # bf16-MXU path (fewer MXU passes); accumulation/bias/tanh still f32.
    out_bf16 = jax.block_until_ready(
        sender_gs_forward(x, w_t, b2, n_hidden=H, matmul_dtype=jnp.bfloat16))
    assert jnp.allclose(out_bf16, ref, atol=2e-2, rtol=2e-2), "bf16 mismatch vs reference"

    print("KERNEL_OK")
</pallas_src>

<mosaic_0001>
module attributes {stable_mosaic.version = 11 : i64} {
  func.func @_sender_gs_kernel(%arg0: i32, %arg1: i32, %arg2: memref<8x16xf32, #tpu.memory_space<vmem>>, %arg3: memref<16x128xf32, #tpu.memory_space<vmem>>, %arg4: memref<1x128xf32, #tpu.memory_space<vmem>>, %arg5: memref<8x128xf32, #tpu.memory_space<vmem>>) attributes {dimension_semantics = [#tpu.dimension_semantics<parallel>, #tpu.dimension_semantics<parallel>], iteration_bounds = array<i64: 1, 1>, scalar_prefetch = 0 : i64, scratch_operands = 0 : i64, tpu.core_type = #tpu.core_type<tc>, window_params = [{transform_indices = @transform_0, window_bounds = array<i64: 8, 16>}, {pipeline_mode = #tpu.pipeline_mode<synchronous>, transform_indices = @transform_1, window_bounds = array<i64: 16, 128>}, {pipeline_mode = #tpu.pipeline_mode<synchronous>, transform_indices = @transform_2, window_bounds = array<i64: 1, 128>}, {transform_indices = @transform_3, window_bounds = array<i64: 8, 128>}]} {
    %c0 = arith.constant 0 : index
    %c0_0 = arith.constant 0 : index
    %0 = vector.load %arg2[%c0, %c0_0] : memref<8x16xf32, #tpu.memory_space<vmem>>, vector<8x16xf32>
    %c0_1 = arith.constant 0 : index
    %c0_2 = arith.constant 0 : index
    %1 = vector.load %arg3[%c0_1, %c0_2] : memref<16x128xf32, #tpu.memory_space<vmem>>, vector<16x128xf32>
    %cst = arith.constant dense<0.000000e+00> : vector<8x128xf32>
    %2 = tpu.matmul %0, %1, %cst {dimension_numbers = #tpu.dot_dimension_numbers<[1], [0], [0], [1], [0, 0, 1, 1], [], []>} : vector<8x16xf32>, vector<16x128xf32>, vector<8x128xf32> -> vector<8x128xf32>
    %c0_3 = arith.constant 0 : index
    %c0_4 = arith.constant 0 : index
    %3 = vector.load %arg4[%c0_3, %c0_4] : memref<1x128xf32, #tpu.memory_space<vmem>>, vector<1x128xf32>
    %4 = vector.broadcast %3 : vector<1x128xf32> to vector<8x128xf32>
    %5 = arith.addf %2, %4 : vector<8x128xf32>
    %6 = math.tanh %5 : vector<8x128xf32>
    %c0_5 = arith.constant 0 : index
    %c0_6 = arith.constant 0 : index
    %7 = vector.load %arg5[%c0_5, %c0_6] : memref<8x128xf32, #tpu.memory_space<vmem>>, vector<8x128xf32>
    tpu.vector_store %arg5[%c0_5, %c0_6], %6 {strides = array<i32>} : memref<8x128xf32, #tpu.memory_space<vmem>>, vector<8x128xf32>,
    return
  }
  func.func @transform_0(%arg0: i32, %arg1: i32) -> (i32, i32) {
    %c0_i32 = arith.constant 0 : i32
    %c0_i32_0 = arith.constant 0 : i32
    return %arg0, %c0_i32 : i32, i32
  }
  func.func @transform_1(%arg0: i32, %arg1: i32) -> (i32, i32) {
    %c0_i32 = arith.constant 0 : i32
    %c0_i32_0 = arith.constant 0 : i32
    return %c0_i32, %arg1 : i32, i32
  }
  func.func @transform_2(%arg0: i32, %arg1: i32) -> (i32, i32) {
    %c0_i32 = arith.constant 0 : i32
    %c0_i32_0 = arith.constant 0 : i32
    return %c0_i32, %arg1 : i32, i32
  }
  func.func @transform_3(%arg0: i32, %arg1: i32) -> (i32, i32) {
    %c0_i32 = arith.constant 0 : i32
    return %arg0, %arg1 : i32, i32
  }
}

</mosaic_0001>

<bundles_post_ra>
// kernel: tpu_custom_call.1
= control target key start
LH: loop header
LB: loop body
LE: loop exit
PB: predicated region body
PF: predicated region fallthrough
CT: control target
= control target key end

     0   :  { %8 = vsyncpa [#allocation3], 0  ;;  %s269_s0 = inlined_call_operand.hbm [shape: f32[8,16], index: 0, kind: input, shape index: {}]   ;;  %s270_s1 = inlined_call_operand.hbm [shape: f32[16,128], index: 1, kind: input, shape index: {}]   ;;  %s271_s2 = inlined_call_operand.vmem [shape: f32[1,128], index: 2, kind: input, shape index: {}]   ;;  %s272_s3 = inlined_call_operand.hbm [shape: f32[8,128], index: 3, kind: output, shape index: {}]  }
   0x1   :  { %9 = vsyncpa [#allocation6], 0 }
   0x2   :  { %10 = vsyncpa [#allocation4], 0  ;;  %s230_s12 = smov [#allocation2]   ;;  %s231_s14 = smov [#allocation5]  }
   0x3   :  { %s17_s13 = sshll.u32 %s230_s12, 4  ;;  %s26_s15 = sshll.u32 %s231_s14, 4  ;;  %s18_s13 = int_to_ptr.vmem [resolvable:$true] %s17_s13  ;;  %s27_s15 = int_to_ptr.vmem [resolvable:$true] %s26_s15 }
   0x4   :  { %s172_s16 = scalar_lea.vmem %s18_s13, 128  ;;  %p177_p1 = scmp.lt.s32.totalorder %s18_s13, %s18_s13 }
   0x5   :  { %p173_p0 = scmp.ne.s32.totalorder %s18_s13, %s172_s16  ;;  %p178_p2 = scmp.lt.s32.totalorder %s172_s16, %s172_s16 }
   0x7   :  { %p179_p3 = por %p178_p2, %p177_p1 }
   0x9   :  { %p180_p4 = pnand %p179_p3, %p173_p0 }
   0xb   :  { %183 = shalt.err (!%p180_p4)
}
   0xc   :  { %20 = dma.hbm_to_vmem [thread:$0]  %s269_s0, 128, %s18_s13, [#allocation3]  }
   0xd   :  { %s192_s19 = scalar_lea.vmem %s27_s15, 256  ;;  %p197_p6 = scmp.lt.s32.totalorder %s27_s15, %s27_s15 }
   0xe   :  { %p193_p5 = scmp.ne.s32.totalorder %s27_s15, %s192_s19  ;;  %p198_p7 = scmp.lt.s32.totalorder %s192_s19, %s192_s19 }
  0x10   :  { %p199_p8 = por %p198_p7, %p197_p6 }
  0x12   :  { %p200_p9 = pnand %p199_p8, %p193_p5 }
  0x14   :  { %203 = shalt.err (!%p200_p9)
}
  0x15   :  { %s232_s20 = smov 128   ;;  %s233_s21 = smov 8  }
  0x16   :  { %32 = dma.hbm_to_vmem [thread:$0]  %s270_s1, 256, %s27_s15, [#allocation6], %s232_s20, %s232_s20, %s233_s21  }
  0x17   :  { %224 = dma.done.wait [#allocation3], 128  }
  0x18   :  { %225 = vsyncadd [#allocation3], 4294967168 }
  0x19   :  { %226 = dma.done.wait [#allocation6], 256  }
  0x1a   :  { %227 = vsyncadd [#allocation6], 4294967040  ;;  %v234_v0 = vmov 0.0   ;;  %vm235_vm0 = vmmov 0   ;;  %v43_v1 = vld [vmem:[#allocation5 + $0x8] sm:$0xff]  ;;  %v42_v2 = vld [vmem:[#allocation5] sm:$0xff] }
  0x1b   :  { %148 = vmatprep.subr.mxu0 %v234_v0  ;;  %152 = vmatprep.mubr.msk.f32.mxu0 %vm235_vm0, %v234_v0  ;;  %v41_v3 = vld [vmem:[#allocation2] sm:$0xff]  ;;  %vm51_vm1 = vcmask 130048   ;;  %s236_s1 = smov [#allocation7]  }
  0x1c   :  { %149 = vmatpush3.msra.mxu0 %v43_v1  ;;  %v143_v4 = vld [vmem:[%s271_s2] ss:$0 sm:$0xff]  ;;  %s133_s25 = sshll.u32 %s236_s1, 4  ;;  %s134_s25 = int_to_ptr.vmem [resolvable:$true] %s133_s25 }
  0x1d   :  { %150 = vmatprep.subr.mxu0 %v234_v0  ;;  %s204_s26 = scalar_lea.vmem %s134_s25, 128  ;;  %p209_p11 = scmp.lt.s32.totalorder %s134_s25, %s134_s25 }
  0x1e   :  { %151 = vmatpush3.msra.mxu0 %v42_v2  ;;  %p205_p10 = scmp.ne.s32.totalorder %s134_s25, %s204_s26  ;;  %p210_p12 = scmp.lt.s32.totalorder %s204_s26, %s204_s26 }
  0x1f   :  { %153 = vmatmul.mubr.msk.f32.vlgmr.msra.gmra.mxu0 %vm51_vm1, %v41_v3 }
  0x20   :  { %p211_p13 = por %p210_p12, %p209_p11 }
  0x22   :  { %p212_p0 = pnand %p211_p13, %p205_p10 }
  0xdf   :  { %v121_v5 = vpop.f32.mrf.mxu0 }
  0xe0   :  { %v122_v6 = vadd.f32 %v143_v4, %v121_v5 }
  0xe1   :  { %v154_v7 = vpop.f32.mrf.mxu0 }
  0xe2   :  { %162 = vtanh.f32 %v122_v6 }
  0xef   :  { %v163_v8 = vpop.eup %162 }
  0xf0   :  { %126 = vst [vmem:[#allocation7] sm:$0xff] %v163_v8 }
  0xf1   :  { %215 = shalt.err (!%p212_p0)
}
  0xf2   :  { %136 = dma.vmem_to_hbm [thread:$0]  %s134_s25, 128, %s272_s3, [#allocation4]  }
  0xf3   :  { %228 = dma.done.wait [#allocation4], 128  }
  0xf4   :  { %229 = vsyncadd [#allocation4], 4294967168 }
  0xf5   :  { %140 = vsyncpa [#allocation3], 1 }
  0xf6   :  { %141 = vsyncpa [#allocation6], 1 }
  0xf7   :  { %142 = vsyncpa [#allocation4], 1 }

</bundles_post_ra>
